<compile_context>
chip_gen: v6e
topology: v6e:2x2x1
jax: 0.10.0
libtpu: 0.0.40
codegen_flags: <defaults>
</compile_context>

<pallas_src>
import math

import jax
import jax.numpy as jnp
from jax.experimental import pallas as pl
from jax.experimental.pallas import tpu as pltpu


def gcn_kernel(a_ref, x_ref, w_ref, b_ref, o_ref, acc_ref):
    """One (i, k) grid step of out = (adj @ x) @ W + b.

    acc[i] += adj[i, k] @ x[k] over the node/reduction axis k; on the last k the
    (bm, K_pad) aggregate is projected through W once, the bias is added, and
    the (bm, F_pad) output tile is stored lane-dense.
    """
    k = pl.program_id(1)

    @pl.when(k == 0)
    def _():
        acc_ref[...] = jnp.zeros_like(acc_ref)

    # Aggregate node features over this adjacency tile: (bm, bk) @ (bk, K_pad).
    acc_ref[...] += jnp.dot(a_ref[...], x_ref[...],
                            preferred_element_type=jnp.float32)

    @pl.when(k == pl.num_programs(1) - 1)
    def _():
        # Single weight projection per output row block: (bm, K_pad) @ (K_pad, F_pad).
        proj = jnp.dot(acc_ref[...].astype(w_ref.dtype), w_ref[...],
                       preferred_element_type=jnp.float32)
        o_ref[...] = (proj + b_ref[...]).astype(o_ref.dtype)


def _round_up(v, m):
    return ((v + m - 1) // m) * m


def _pad2d(x, rows, cols):
    r, c = x.shape
    return jnp.pad(x, ((0, rows - r), (0, cols - c)))


def gcn_forward(x, adj, weight, bias=None, *, bm=512, bk=512,
                compute_dtype=jnp.bfloat16):
    """out = adj @ (x @ weight) + bias, computed as one fused Pallas kernel.

    Matmul operands are cast to `compute_dtype` (bfloat16 by default) in the
    wrapper; accumulation, bias add and the output stay float32.
    """
    n, k_in = x.shape
    f_out = weight.shape[1]
    if bias is None:
        bias = jnp.zeros((f_out,), jnp.float32)

    assert bm % 128 == 0 and bk % 128 == 0, "tile sizes must be lane-aligned"

    k_pad = _round_up(k_in, 128)
    f_pad = _round_up(f_out, 128)

    # Clamp tiles to the 128-aligned problem size, then pad N to a multiple of
    # lcm(bm, bk) so both grid axes always divide evenly (review fix: was
    # round_up(n, max(bm, bk)), wrong for non-nested tile sizes).
    n_min = _round_up(n, 128)
    bm = min(bm, n_min)
    bk = min(bk, n_min)
    n_pad = _round_up(n, math.lcm(bm, bk))

    a_p = _pad2d(adj.astype(jnp.float32), n_pad, n_pad).astype(compute_dtype)
    x_p = _pad2d(x.astype(jnp.float32), n_pad, k_pad).astype(compute_dtype)
    w_p = _pad2d(weight.astype(jnp.float32), k_pad, f_pad).astype(compute_dtype)
    b_p = _pad2d(bias.reshape(1, -1).astype(jnp.float32), 1, f_pad)

    grid = (n_pad // bm, n_pad // bk)

    out = pl.pallas_call(
        gcn_kernel,
        out_shape=jax.ShapeDtypeStruct((n_pad, f_pad), jnp.float32),
        grid_spec=pltpu.PrefetchScalarGridSpec(
            num_scalar_prefetch=0,
            grid=grid,
            in_specs=[
                pl.BlockSpec((bm, bk), lambda i, k: (i, k)),         # adj tile
                pl.BlockSpec((bk, k_pad), lambda i, k: (k, 0)),      # node features
                pl.BlockSpec((k_pad, f_pad), lambda i, k: (0, 0)),   # full weight
                pl.BlockSpec((1, f_pad), lambda i, k: (0, 0)),       # bias row
            ],
            out_specs=pl.BlockSpec((bm, f_pad), lambda i, k: (i, 0)),
            scratch_shapes=[pltpu.VMEM((bm, k_pad), jnp.float32)],
        ),
        compiler_params=pltpu.CompilerParams(
            dimension_semantics=("parallel", "arbitrary")),
    )(a_p, x_p, w_p, b_p)

    return out[:n, :f_out]


def init_params(key, in_features, out_features):
    # Mirror GraphConvolution.reset_parameters(): U(-stdv, stdv), stdv = 1/sqrt(F).
    kw, kb = jax.random.split(key)
    stdv = 1.0 / math.sqrt(out_features)
    weight = jax.random.uniform(kw, (in_features, out_features), jnp.float32,
                                -stdv, stdv)
    bias = jax.random.uniform(kb, (out_features,), jnp.float32, -stdv, stdv)
    return weight, bias


def gcn_reference(x, adj, weight, bias):
    support = jnp.dot(x, weight, precision=jax.lax.Precision.HIGHEST)
    return jnp.dot(adj, support, precision=jax.lax.Precision.HIGHEST) + bias


if __name__ == "__main__":
    N, IN_F, OUT_F = 200, 100, 50

    key = jax.random.PRNGKey(0)
    kx, ka, kp = jax.random.split(key, 3)

    x = jax.random.normal(kx, (N, IN_F), jnp.float32)
    # Symmetric, row-normalized random adjacency with self-loops (typical GCN input).
    adj_raw = (jax.random.uniform(ka, (N, N)) < 0.05).astype(jnp.float32)
    adj = adj_raw + adj_raw.T + jnp.eye(N, dtype=jnp.float32)
    adj = adj / jnp.sum(adj, axis=1, keepdims=True)

    weight, bias = init_params(kp, IN_F, OUT_F)
    ref = gcn_reference(x, adj, weight, bias)

    # f32-operand path: tight check against the HIGHEST-precision reference.
    out_f32 = jax.block_until_ready(
        gcn_forward(x, adj, weight, bias, compute_dtype=jnp.float32))
    assert out_f32.shape == (N, OUT_F), out_f32.shape
    err_f32 = jnp.max(jnp.abs(out_f32 - ref))
    assert jnp.allclose(out_f32, ref, atol=5e-3, rtol=5e-3), (
        f"f32 max abs diff {err_f32}")

    # Default bf16-operand (perf) path: bf16-level tolerance vs f32 reference.
    out = jax.block_until_ready(gcn_forward(x, adj, weight, bias))
    assert out.shape == (N, OUT_F), out.shape
    err_bf16 = jnp.max(jnp.abs(out - ref))
    assert jnp.allclose(out, ref, atol=3e-2, rtol=3e-2), (
        f"bf16 max abs diff {err_bf16}")

    print("KERNEL_OK")
</pallas_src>

<mosaic_0001>
module attributes {stable_mosaic.version = 11 : i64} {
  func.func @gcn_kernel(%arg0: i32, %arg1: i32, %arg2: memref<256x256xf32, #tpu.memory_space<vmem>>, %arg3: memref<256x128xf32, #tpu.memory_space<vmem>>, %arg4: memref<128x128xf32, #tpu.memory_space<vmem>>, %arg5: memref<1x128xf32, #tpu.memory_space<vmem>>, %arg6: memref<256x128xf32, #tpu.memory_space<vmem>>, %arg7: memref<256x128xf32, #tpu.memory_space<vmem>>) attributes {dimension_semantics = [#tpu.dimension_semantics<parallel>, #tpu.dimension_semantics<arbitrary>], iteration_bounds = array<i64: 1, 1>, scalar_prefetch = 0 : i64, scratch_operands = 1 : i64, tpu.core_type = #tpu.core_type<tc>, window_params = [{transform_indices = @transform_0, window_bounds = array<i64: 256, 256>}, {transform_indices = @transform_1, window_bounds = array<i64: 256, 128>}, {pipeline_mode = #tpu.pipeline_mode<synchronous>, transform_indices = @transform_2, window_bounds = array<i64: 128, 128>}, {pipeline_mode = #tpu.pipeline_mode<synchronous>, transform_indices = @transform_3, window_bounds = array<i64: 1, 128>}, {transform_indices = @transform_4, window_bounds = array<i64: 256, 128>}]} {
    %c0_i32 = arith.constant 0 : i32
    %0 = arith.cmpi eq, %arg1, %c0_i32 : i32
    %1 = arith.extui %0 : i1 to i32
    %c0_i32_0 = arith.constant 0 : i32
    %2 = arith.cmpi ne, %1, %c0_i32_0 : i32
    scf.if %2 {
      %cst_10 = arith.constant 0.000000e+00 : f32
      %12 = vector.broadcast %cst_10 : f32 to vector<256x128xf32>
      %c0_11 = arith.constant 0 : index
      %c0_12 = arith.constant 0 : index
      %13 = vector.load %arg7[%c0_11, %c0_12] : memref<256x128xf32, #tpu.memory_space<vmem>>, vector<256x128xf32>
      tpu.vector_store %arg7[%c0_11, %c0_12], %12 {strides = array<i32>} : memref<256x128xf32, #tpu.memory_space<vmem>>, vector<256x128xf32>,
    } else {
    }
    %c0 = arith.constant 0 : index
    %c0_1 = arith.constant 0 : index
    %3 = vector.load %arg7[%c0, %c0_1] : memref<256x128xf32, #tpu.memory_space<vmem>>, vector<256x128xf32>
    %c0_2 = arith.constant 0 : index
    %c0_3 = arith.constant 0 : index
    %4 = vector.load %arg2[%c0_2, %c0_3] : memref<256x256xf32, #tpu.memory_space<vmem>>, vector<256x256xf32>
    %c0_4 = arith.constant 0 : index
    %c0_5 = arith.constant 0 : index
    %5 = vector.load %arg3[%c0_4, %c0_5] : memref<256x128xf32, #tpu.memory_space<vmem>>, vector<256x128xf32>
    %cst = arith.constant dense<0.000000e+00> : vector<256x128xf32>
    %6 = tpu.matmul %4, %5, %cst {dimension_numbers = #tpu.dot_dimension_numbers<[1], [0], [0], [1], [0, 0, 1, 1], [], []>} : vector<256x256xf32>, vector<256x128xf32>, vector<256x128xf32> -> vector<256x128xf32>
    %7 = arith.addf %3, %6 : vector<256x128xf32>
    %c0_6 = arith.constant 0 : index
    %c0_7 = arith.constant 0 : index
    %8 = vector.load %arg7[%c0_6, %c0_7] : memref<256x128xf32, #tpu.memory_space<vmem>>, vector<256x128xf32>
    tpu.vector_store %arg7[%c0_6, %c0_7], %7 {strides = array<i32>} : memref<256x128xf32, #tpu.memory_space<vmem>>, vector<256x128xf32>,
    %c0_i32_8 = arith.constant 0 : i32
    %9 = arith.cmpi eq, %arg1, %c0_i32_8 : i32
    %10 = arith.extui %9 : i1 to i32
    %c0_i32_9 = arith.constant 0 : i32
    %11 = arith.cmpi ne, %10, %c0_i32_9 : i32
    scf.if %11 {
      %c0_10 = arith.constant 0 : index
      %c0_11 = arith.constant 0 : index
      %12 = vector.load %arg7[%c0_10, %c0_11] : memref<256x128xf32, #tpu.memory_space<vmem>>, vector<256x128xf32>
      %c0_12 = arith.constant 0 : index
      %c0_13 = arith.constant 0 : index
      %13 = vector.load %arg4[%c0_12, %c0_13] : memref<128x128xf32, #tpu.memory_space<vmem>>, vector<128x128xf32>
      %cst_14 = arith.constant dense<0.000000e+00> : vector<256x128xf32>
      %14 = tpu.matmul %12, %13, %cst_14 {dimension_numbers = #tpu.dot_dimension_numbers<[1], [0], [0], [1], [0, 0, 1, 1], [], []>} : vector<256x128xf32>, vector<128x128xf32>, vector<256x128xf32> -> vector<256x128xf32>
      %c0_15 = arith.constant 0 : index
      %c0_16 = arith.constant 0 : index
      %15 = vector.load %arg5[%c0_15, %c0_16] : memref<1x128xf32, #tpu.memory_space<vmem>>, vector<1x128xf32>
      %16 = vector.broadcast %15 : vector<1x128xf32> to vector<256x128xf32>
      %17 = arith.addf %14, %16 : vector<256x128xf32>
      %c0_17 = arith.constant 0 : index
      %c0_18 = arith.constant 0 : index
      %18 = vector.load %arg6[%c0_17, %c0_18] : memref<256x128xf32, #tpu.memory_space<vmem>>, vector<256x128xf32>
      tpu.vector_store %arg6[%c0_17, %c0_18], %17 {strides = array<i32>} : memref<256x128xf32, #tpu.memory_space<vmem>>, vector<256x128xf32>,
    } else {
    }
    return
  }
  func.func @transform_0(%arg0: i32, %arg1: i32) -> (i32, i32) {
    %c0_i32 = arith.constant 0 : i32
    return %arg0, %arg1 : i32, i32
  }
  func.func @transform_1(%arg0: i32, %arg1: i32) -> (i32, i32) {
    %c0_i32 = arith.constant 0 : i32
    %c0_i32_0 = arith.constant 0 : i32
    return %arg1, %c0_i32 : i32, i32
  }
  func.func @transform_2(%arg0: i32, %arg1: i32) -> (i32, i32) {
    %c0_i32 = arith.constant 0 : i32
    %c0_i32_0 = arith.constant 0 : i32
    %c0_i32_1 = arith.constant 0 : i32
    return %c0_i32, %c0_i32_0 : i32, i32
  }
  func.func @transform_3(%arg0: i32, %arg1: i32) -> (i32, i32) {
    %c0_i32 = arith.constant 0 : i32
    %c0_i32_0 = arith.constant 0 : i32
    %c0_i32_1 = arith.constant 0 : i32
    return %c0_i32, %c0_i32_0 : i32, i32
  }
  func.func @transform_4(%arg0: i32, %arg1: i32) -> (i32, i32) {
    %c0_i32 = arith.constant 0 : i32
    %c0_i32_0 = arith.constant 0 : i32
    return %arg0, %c0_i32 : i32, i32
  }
}

</mosaic_0001>

<bundles_post_ra>
// kernel: tpu_custom_call.1
= control target key start
LH: loop header
LB: loop body
LE: loop exit
PB: predicated region body
PF: predicated region fallthrough
CT: control target
= control target key end

     0   :  { %9 = vsyncpa [#allocation4], 0  ;;  %s1307_s0 = inlined_call_operand.hbm [shape: f32[256,256], index: 0, kind: input, shape index: {}]   ;;  %s1308_s1 = inlined_call_operand.hbm [shape: f32[256,128], index: 1, kind: input, shape index: {}]   ;;  %s1309_s2 = inlined_call_operand.hbm [shape: f32[128,128], index: 2, kind: input, shape index: {}]   ;;  %s1310_s3 = inlined_call_operand.vmem [shape: f32[1,128], index: 3, kind: input, shape index: {}]   ;;  %s1311_s4 = inlined_call_operand.hbm [shape: f32[256,128], index: 4, kind: output, shape index: {}]  }
   0x1   :  { %10 = vsyncpa [#allocation7], 0 }
   0x2   :  { %11 = vsyncpa [#allocation5], 0  ;;  %s1133_s15 = smov [#allocation6]  }
   0x3   :  { %s29_s16 = sshll.u32 %s1133_s15, 4  ;;  %s30_s16 = int_to_ptr.vmem [resolvable:$true] %s29_s16 }
   0x4   :  { %s1055_s17 = scalar_lea.vmem %s30_s16, 4096  ;;  %p1060_p1 = scmp.lt.s32.totalorder %s30_s16, %s30_s16 }
   0x5   :  { %p1056_p0 = scmp.ne.s32.totalorder %s30_s16, %s1055_s17  ;;  %p1061_p2 = scmp.lt.s32.totalorder %s1055_s17, %s1055_s17 }
   0x7   :  { %p1062_p3 = por %p1061_p2, %p1060_p1 }
   0x9   :  { %p1063_p4 = pnand %p1062_p3, %p1056_p0 }
   0xb   :  { %1066 = shalt.err (!%p1063_p4)
}
   0xc   :  { %s1134_s18 = smov 128   ;;  %s1135_s19 = smov 8  }
   0xd   :  { %35 = dma.hbm_to_vmem [thread:$0]  %s1308_s1, 4096, %s30_s16, [#allocation7], %s1134_s18, %s1134_s18, %s1135_s19  }
   0xe   :  { %s1136_s22 = smov [#allocation3]  }
   0xf   :  { %s17_s23 = sshll.u32 %s1136_s22, 4  ;;  %s18_s23 = int_to_ptr.vmem [resolvable:$true] %s17_s23 }
  0x10   :  { %s1075_s24 = scalar_lea.vmem %s18_s23, 8192  ;;  %p1080_p6 = scmp.lt.s32.totalorder %s18_s23, %s18_s23 }
  0x11   :  { %p1076_p5 = scmp.ne.s32.totalorder %s18_s23, %s1075_s24  ;;  %p1081_p7 = scmp.lt.s32.totalorder %s1075_s24, %s1075_s24 }
  0x13   :  { %p1082_p8 = por %p1081_p7, %p1080_p6 }
  0x15   :  { %p1083_p9 = pnand %p1082_p8, %p1076_p5 }
  0x17   :  { %1086 = shalt.err (!%p1083_p9)
}
  0x18   :  { %s1137_s25 = smov 256   ;;  %s1138_s26 = smov 16  }
  0x19   :  { %23 = dma.hbm_to_vmem [thread:$0]  %s1307_s0, 8192, %s18_s23, [#allocation4], %s1137_s25, %s1137_s25, %s1138_s26  }
  0x1a   :  { %s1139_s29 = smov [#allocation8]  }
  0x1b   :  { %s41_s30 = sshll.u32 %s1139_s29, 4  ;;  %s42_s30 = int_to_ptr.vmem [resolvable:$true] %s41_s30 }
  0x1c   :  { %s1095_s1 = scalar_lea.vmem %s42_s30, 2048  ;;  %p1100_p11 = scmp.lt.s32.totalorder %s42_s30, %s42_s30 }
  0x1d   :  { %p1096_p10 = scmp.ne.s32.totalorder %s42_s30, %s1095_s1  ;;  %p1101_p12 = scmp.lt.s32.totalorder %s1095_s1, %s1095_s1 }
  0x1f   :  { %p1102_p13 = por %p1101_p12, %p1100_p11 }
  0x21   :  { %p1103_p0 = pnand %p1102_p13, %p1096_p10 }
  0x23   :  { %1106 = shalt.err (!%p1103_p0)
}
  0x24   :  { %47 = dma.hbm_to_vmem [thread:$0]  %s1309_s2, 2048, %s42_s30, [#allocation7], %s1134_s18, %s1134_s18, %s1135_s19  }
  0x25   :  { %1127 = dma.done.wait [#allocation4], 8192  }
  0x26   :  { %1128 = vsyncadd [#allocation4], 4294959104 }
  0x27   :  { %1129 = dma.done.wait [#allocation7], 6144  }
  0x28   :  { %1130 = vsyncadd [#allocation7], 4294961152  ;;  %v1140_v0 = vmov 0.0   ;;  %v206_v1 = vld [vmem:[#allocation6 + $0x78] sm:$0xff]  ;;  %v205_v2 = vld [vmem:[#allocation6 + $0x70] sm:$0xff] }
  0x29   :  { %223 = vmatprep.subr.mxu0 %v1140_v0  ;;  %974 = vmatprep.subr.mxu1 %v1140_v0  ;;  %v204_v3 = vld [vmem:[#allocation6 + $0x68] sm:$0xff]  ;;  %v203_v4 = vld [vmem:[#allocation6 + $0x60] sm:$0xff]  ;;  %v202_v5 = vld [vmem:[#allocation6 + $0x58] sm:$0xff] }
  0x2a   :  { %224 = vmatpush1.msra.mxu0 %v206_v1  ;;  %1006 = vmatpush1.msra.mxu1 %v206_v1  ;;  %v201_v6 = vld [vmem:[#allocation6 + $0x50] sm:$0xff]  ;;  %v200_v7 = vld [vmem:[#allocation6 + $0x48] sm:$0xff]  ;;  %v199_v9 = vld [vmem:[#allocation6 + $0x40] sm:$0xff] }
  0x2b   :  { %225 = vmatprep.subr.mxu0 %v1140_v0  ;;  %975 = vmatprep.subr.mxu1 %v1140_v0  ;;  %v128_v8 = vld [vmem:[#allocation3 + $0x8] sm:$0xff]  ;;  %v198_v10 = vld [vmem:[#allocation6 + $0x38] sm:$0xff]  ;;  %v197_v11 = vld [vmem:[#allocation6 + $0x30] sm:$0xff] }
  0x2c   :  { %226 = vmatpush1.msra.mxu0 %v205_v2  ;;  %1007 = vmatpush1.msra.mxu1 %v205_v2  ;;  %v196_v12 = vld [vmem:[#allocation6 + $0x28] sm:$0xff]  ;;  %v195_v13 = vld [vmem:[#allocation6 + $0x20] sm:$0xff]  ;;  %v194_v14 = vld [vmem:[#allocation6 + $0x18] sm:$0xff] }
  0x2d   :  { %227 = vmatprep.subr.mxu0 %v1140_v0  ;;  %976 = vmatprep.subr.mxu1 %v1140_v0  ;;  %v193_v15 = vld [vmem:[#allocation6 + $0x10] sm:$0xff]  ;;  %v192_v16 = vld [vmem:[#allocation6 + $0x8] sm:$0xff]  ;;  %v191_v17 = vld [vmem:[#allocation6] sm:$0xff] }
  0x2e   :  { %228 = vmatpush1.msra.mxu0 %v204_v3  ;;  %1008 = vmatpush1.msra.mxu1 %v204_v3  ;;  %v222_v18 = vld [vmem:[#allocation6 + $0xf8] sm:$0xff]  ;;  %v221_v19 = vld [vmem:[#allocation6 + $0xf0] sm:$0xff]  ;;  %v220_v20 = vld [vmem:[#allocation6 + $0xe8] sm:$0xff] }
  0x2f   :  { %229 = vmatprep.subr.mxu0 %v1140_v0  ;;  %977 = vmatprep.subr.mxu1 %v1140_v0  ;;  %v219_v21 = vld [vmem:[#allocation6 + $0xe0] sm:$0xff]  ;;  %v218_v22 = vld [vmem:[#allocation6 + $0xd8] sm:$0xff]  ;;  %v217_v23 = vld [vmem:[#allocation6 + $0xd0] sm:$0xff] }
  0x30   :  { %230 = vmatpush1.msra.mxu0 %v203_v4  ;;  %1009 = vmatpush1.msra.mxu1 %v203_v4  ;;  %v216_v24 = vld [vmem:[#allocation6 + $0xc8] sm:$0xff]  ;;  %v215_v25 = vld [vmem:[#allocation6 + $0xc0] sm:$0xff]  ;;  %v214_v26 = vld [vmem:[#allocation6 + $0xb8] sm:$0xff] }
  0x31   :  { %231 = vmatprep.subr.mxu0 %v1140_v0  ;;  %978 = vmatprep.subr.mxu1 %v1140_v0  ;;  %v213_v27 = vld [vmem:[#allocation6 + $0xb0] sm:$0xff]  ;;  %v212_v28 = vld [vmem:[#allocation6 + $0xa8] sm:$0xff]  ;;  %v211_v29 = vld [vmem:[#allocation6 + $0xa0] sm:$0xff] }
  0x32   :  { %232 = vmatpush1.msra.mxu0 %v202_v5  ;;  %1010 = vmatpush1.msra.mxu1 %v202_v5  ;;  %v210_v30 = vld [vmem:[#allocation6 + $0x98] sm:$0xff]  ;;  %v209_v31 = vld [vmem:[#allocation6 + $0x90] sm:$0xff]  ;;  %v208_v32 = vld [vmem:[#allocation6 + $0x88] sm:$0xff] }
  0x33   :  { %233 = vmatprep.subr.mxu0 %v1140_v0  ;;  %979 = vmatprep.subr.mxu1 %v1140_v0  ;;  %v207_v33 = vld [vmem:[#allocation6 + $0x80] sm:$0xff]  ;;  %v130_v35 = vld [vmem:[#allocation3 + $0x18] sm:$0xff]  ;;  %v176_v36 = vld [vmem:[#allocation3 + $0x188] sm:$0xff] }
  0x34   :  { %234 = vmatpush1.msra.mxu0 %v201_v6  ;;  %287 = vmatprep.mubr.f32.mxu0 %v128_v8  ;;  %v127_v34 = vld [vmem:[#allocation3] sm:$0xff]  ;;  %v562_v38 = vld [vmem:[#allocation8 + $0x78] sm:$0xff]  ;;  %v129_v40 = vld [vmem:[#allocation3 + $0x10] sm:$0xff] }
  0x35   :  { %235 = vmatprep.subr.mxu0 %v1140_v0  ;;  %1011 = vmatpush1.msra.mxu1 %v201_v6  ;;  %v175_v37 = vld [vmem:[#allocation3 + $0x180] sm:$0xff]  ;;  %v178_v39 = vld [vmem:[#allocation3 + $0x198] sm:$0xff]  ;;  %v561_v41 = vld [vmem:[#allocation8 + $0x70] sm:$0xff] }
  0x36   :  { %236 = vmatpush1.msra.mxu0 %v200_v7  ;;  %980 = vmatprep.subr.mxu1 %v1140_v0  ;;  %v132_v42 = vld [vmem:[#allocation3 + $0x28] sm:$0xff]  ;;  %v177_v43 = vld [vmem:[#allocation3 + $0x190] sm:$0xff]  ;;  %v131_v46 = vld [vmem:[#allocation3 + $0x20] sm:$0xff] }
  0x37   :  { %237 = vmatprep.subr.mxu0 %v1140_v0  ;;  %1012 = vmatpush1.msra.mxu1 %v200_v7  ;;  %v560_v44 = vld [vmem:[#allocation8 + $0x68] sm:$0xff]  ;;  %v559_v47 = vld [vmem:[#allocation8 + $0x60] sm:$0xff]  ;;  %v134_v48 = vld [vmem:[#allocation3 + $0x38] sm:$0xff] }
  0x38   :  { %238 = vmatpush1.msra.mxu0 %v199_v9  ;;  %981 = vmatprep.subr.mxu1 %v1140_v0  ;;  %v180_v45 = vld [vmem:[#allocation3 + $0x1a8] sm:$0xff]  ;;  %v179_v49 = vld [vmem:[#allocation3 + $0x1a0] sm:$0xff]  ;;  %v558_v50 = vld [vmem:[#allocation8 + $0x58] sm:$0xff] }
  0x39   :  { %239 = vmatprep.subr.mxu0 %v1140_v0  ;;  %1013 = vmatpush1.msra.mxu1 %v199_v9  ;;  %v182_v51 = vld [vmem:[#allocation3 + $0x1b8] sm:$0xff]  ;;  %v133_v52 = vld [vmem:[#allocation3 + $0x30] sm:$0xff]  ;;  %v136_v54 = vld [vmem:[#allocation3 + $0x48] sm:$0xff] }
  0x3a   :  { %240 = vmatpush1.msra.mxu0 %v198_v10  ;;  %982 = vmatprep.subr.mxu1 %v1140_v0  ;;  %v557_v53 = vld [vmem:[#allocation8 + $0x50] sm:$0xff]  ;;  %v556_v56 = vld [vmem:[#allocation8 + $0x48] sm:$0xff]  ;;  %v135_v58 = vld [vmem:[#allocation3 + $0x40] sm:$0xff] }
  0x3b   :  { %241 = vmatprep.subr.mxu0 %v1140_v0  ;;  %1014 = vmatpush1.msra.mxu1 %v198_v10  ;;  %v181_v55 = vld [vmem:[#allocation3 + $0x1b0] sm:$0xff]  ;;  %v184_v57 = vld [vmem:[#allocation3 + $0x1c8] sm:$0xff]  ;;  %v555_v59 = vld [vmem:[#allocation8 + $0x40] sm:$0xff] }
  0x3c   :  { %242 = vmatpush1.msra.mxu0 %v197_v11  ;;  %983 = vmatprep.subr.mxu1 %v1140_v0  ;;  %v138_v60 = vld [vmem:[#allocation3 + $0x58] sm:$0xff]  ;;  %v183_v61 = vld [vmem:[#allocation3 + $0x1c0] sm:$0xff]  ;;  %v553_v1 = vld [vmem:[#allocation8 + $0x30] sm:$0xff] }
  0x3d   :  { %243 = vmatprep.subr.mxu0 %v1140_v0  ;;  %1015 = vmatpush1.msra.mxu1 %v197_v11  ;;  %v554_v62 = vld [vmem:[#allocation8 + $0x38] sm:$0xff]  ;;  %v140_v2 = vld [vmem:[#allocation3 + $0x68] sm:$0xff]  ;;  %v185_v3 = vld [vmem:[#allocation3 + $0x1d0] sm:$0xff] }
  0x3e   :  { %244 = vmatpush1.msra.mxu0 %v196_v12  ;;  %984 = vmatprep.subr.mxu1 %v1140_v0  ;;  %v186_v63 = vld [vmem:[#allocation3 + $0x1d8] sm:$0xff]  ;;  %v552_v4 = vld [vmem:[#allocation8 + $0x28] sm:$0xff]  ;;  %v139_v6 = vld [vmem:[#allocation3 + $0x60] sm:$0xff] }
  0x3f   :  { %245 = vmatprep.subr.mxu0 %v1140_v0  ;;  %1016 = vmatpush1.msra.mxu1 %v196_v12  ;;  %v188_v5 = vld [vmem:[#allocation3 + $0x1e8] sm:$0xff]  ;;  %v551_v7 = vld [vmem:[#allocation8 + $0x20] sm:$0xff]  ;;  %v142_v8 = vld [vmem:[#allocation3 + $0x78] sm:$0xff] }
  0x40   :  { %246 = vmatpush1.msra.mxu0 %v195_v13  ;;  %985 = vmatprep.subr.mxu1 %v1140_v0  ;;  %v187_v9 = vld [vmem:[#allocation3 + $0x1e0] sm:$0xff]  ;;  %v550_v10 = vld [vmem:[#allocation8 + $0x18] sm:$0xff]  ;;  %v141_v12 = vld [vmem:[#allocation3 + $0x70] sm:$0xff] }
  0x41   :  { %247 = vmatprep.subr.mxu0 %v1140_v0  ;;  %1017 = vmatpush1.msra.mxu1 %v195_v13  ;;  %v190_v11 = vld [vmem:[#allocation3 + $0x1f8] sm:$0xff]  ;;  %v549_v13 = vld [vmem:[#allocation8 + $0x10] sm:$0xff] }
  0x42   :  { %248 = vmatpush1.msra.mxu0 %v194_v14  ;;  %986 = vmatprep.subr.mxu1 %v1140_v0 }
  0x43   :  { %249 = vmatprep.subr.mxu0 %v1140_v0  ;;  %1018 = vmatpush1.msra.mxu1 %v194_v14  ;;  %v144_v14 = vld [vmem:[#allocation3 + $0x88] sm:$0xff] }
  0x44   :  { %250 = vmatpush1.msra.mxu0 %v193_v15  ;;  %987 = vmatprep.subr.mxu1 %v1140_v0 }
  0x45   :  { %251 = vmatprep.subr.mxu0 %v1140_v0  ;;  %1019 = vmatpush1.msra.mxu1 %v193_v15  ;;  %v189_v15 = vld [vmem:[#allocation3 + $0x1f0] sm:$0xff] }
  0x46   :  { %252 = vmatpush1.msra.mxu0 %v192_v16  ;;  %988 = vmatprep.subr.mxu1 %v1140_v0 }
  0x47   :  { %253 = vmatprep.subr.mxu0 %v1140_v0  ;;  %1020 = vmatpush1.msra.mxu1 %v192_v16  ;;  %v143_v16 = vld [vmem:[#allocation3 + $0x80] sm:$0xff] }
  0x48   :  { %254 = vmatpush1.msra.mxu0 %v191_v17  ;;  %989 = vmatprep.subr.mxu1 %v1140_v0 }
  0x49   :  { %255 = vmatprep.subr.mxu0 %v1140_v0  ;;  %1021 = vmatpush1.msra.mxu1 %v191_v17  ;;  %v146_v17 = vld [vmem:[#allocation3 + $0x98] sm:$0xff] }
  0x4a   :  { %256 = vmatpush2.msra.mxu0 %v222_v18  ;;  %990 = vmatprep.subr.mxu1 %v1140_v0 }
  0x4b   :  { %257 = vmatprep.subr.mxu0 %v1140_v0  ;;  %1022 = vmatpush2.msra.mxu1 %v222_v18  ;;  %v145_v18 = vld [vmem:[#allocation3 + $0x90] sm:$0xff] }
  0x4c   :  { %258 = vmatpush2.msra.mxu0 %v221_v19  ;;  %991 = vmatprep.subr.mxu1 %v1140_v0 }
  0x4d   :  { %259 = vmatprep.subr.mxu0 %v1140_v0  ;;  %1023 = vmatpush2.msra.mxu1 %v221_v19  ;;  %v148_v19 = vld [vmem:[#allocation3 + $0xa8] sm:$0xff] }
  0x4e   :  { %260 = vmatpush2.msra.mxu0 %v220_v20  ;;  %992 = vmatprep.subr.mxu1 %v1140_v0 }
  0x4f   :  { %261 = vmatprep.subr.mxu0 %v1140_v0  ;;  %1024 = vmatpush2.msra.mxu1 %v220_v20  ;;  %v147_v20 = vld [vmem:[#allocation3 + $0xa0] sm:$0xff] }
  0x50   :  { %262 = vmatpush2.msra.mxu0 %v219_v21  ;;  %993 = vmatprep.subr.mxu1 %v1140_v0 }
  0x51   :  { %263 = vmatprep.subr.mxu0 %v1140_v0  ;;  %1025 = vmatpush2.msra.mxu1 %v219_v21  ;;  %v150_v21 = vld [vmem:[#allocation3 + $0xb8] sm:$0xff] }
  0x52   :  { %264 = vmatpush2.msra.mxu0 %v218_v22  ;;  %994 = vmatprep.subr.mxu1 %v1140_v0 }
  0x53   :  { %265 = vmatprep.subr.mxu0 %v1140_v0  ;;  %1026 = vmatpush2.msra.mxu1 %v218_v22  ;;  %v149_v22 = vld [vmem:[#allocation3 + $0xb0] sm:$0xff] }
  0x54   :  { %266 = vmatpush2.msra.mxu0 %v217_v23  ;;  %995 = vmatprep.subr.mxu1 %v1140_v0 }
  0x55   :  { %267 = vmatprep.subr.mxu0 %v1140_v0  ;;  %1027 = vmatpush2.msra.mxu1 %v217_v23  ;;  %v152_v23 = vld [vmem:[#allocation3 + $0xc8] sm:$0xff] }
  0x56   :  { %268 = vmatpush2.msra.mxu0 %v216_v24  ;;  %996 = vmatprep.subr.mxu1 %v1140_v0 }
  0x57   :  { %269 = vmatprep.subr.mxu0 %v1140_v0  ;;  %1028 = vmatpush2.msra.mxu1 %v216_v24  ;;  %v151_v24 = vld [vmem:[#allocation3 + $0xc0] sm:$0xff] }
  0x58   :  { %270 = vmatpush2.msra.mxu0 %v215_v25  ;;  %997 = vmatprep.subr.mxu1 %v1140_v0 }
  0x59   :  { %271 = vmatprep.subr.mxu0 %v1140_v0  ;;  %1029 = vmatpush2.msra.mxu1 %v215_v25  ;;  %v154_v25 = vld [vmem:[#allocation3 + $0xd8] sm:$0xff] }
  0x5a   :  { %272 = vmatpush2.msra.mxu0 %v214_v26  ;;  %998 = vmatprep.subr.mxu1 %v1140_v0 }
  0x5b   :  { %273 = vmatprep.subr.mxu0 %v1140_v0  ;;  %1030 = vmatpush2.msra.mxu1 %v214_v26  ;;  %v153_v26 = vld [vmem:[#allocation3 + $0xd0] sm:$0xff] }
  0x5c   :  { %274 = vmatpush2.msra.mxu0 %v213_v27  ;;  %999 = vmatprep.subr.mxu1 %v1140_v0 }
  0x5d   :  { %275 = vmatprep.subr.mxu0 %v1140_v0  ;;  %1031 = vmatpush2.msra.mxu1 %v213_v27  ;;  %v156_v27 = vld [vmem:[#allocation3 + $0xe8] sm:$0xff] }
  0x5e   :  { %276 = vmatpush2.msra.mxu0 %v212_v28  ;;  %1000 = vmatprep.subr.mxu1 %v1140_v0 }
  0x5f   :  { %277 = vmatprep.subr.mxu0 %v1140_v0  ;;  %1032 = vmatpush2.msra.mxu1 %v212_v28  ;;  %v155_v28 = vld [vmem:[#allocation3 + $0xe0] sm:$0xff] }
  0x60   :  { %278 = vmatpush2.msra.mxu0 %v211_v29  ;;  %1001 = vmatprep.subr.mxu1 %v1140_v0 }
  0x61   :  { %279 = vmatprep.subr.mxu0 %v1140_v0  ;;  %1033 = vmatpush2.msra.mxu1 %v211_v29  ;;  %v158_v29 = vld [vmem:[#allocation3 + $0xf8] sm:$0xff] }
  0x62   :  { %280 = vmatpush2.msra.mxu0 %v210_v30  ;;  %1002 = vmatprep.subr.mxu1 %v1140_v0 }
  0x63   :  { %281 = vmatprep.subr.mxu0 %v1140_v0  ;;  %1034 = vmatpush2.msra.mxu1 %v210_v30  ;;  %v157_v30 = vld [vmem:[#allocation3 + $0xf0] sm:$0xff] }
  0x64   :  { %282 = vmatpush2.msra.mxu0 %v209_v31  ;;  %1003 = vmatprep.subr.mxu1 %v1140_v0 }
  0x65   :  { %283 = vmatprep.subr.mxu0 %v1140_v0  ;;  %1035 = vmatpush2.msra.mxu1 %v209_v31  ;;  %v160_v31 = vld [vmem:[#allocation3 + $0x108] sm:$0xff] }
  0x66   :  { %284 = vmatpush2.msra.mxu0 %v208_v32  ;;  %1004 = vmatprep.subr.mxu1 %v1140_v0 }
  0x67   :  { %285 = vmatprep.subr.mxu0 %v1140_v0  ;;  %1036 = vmatpush2.msra.mxu1 %v208_v32  ;;  %v159_v32 = vld [vmem:[#allocation3 + $0x100] sm:$0xff] }
  0x68   :  { %286 = vmatpush2.msra.mxu0 %v207_v33  ;;  %1005 = vmatprep.subr.mxu1 %v1140_v0  ;;  %v137_v0 = vld [vmem:[#allocation3 + $0x50] sm:$0xff] }
  0x69   :  { %288 = vmatmul.mubr.f32.vlgmr.msra.gmra.mxu0 %v127_v34  ;;  %1037 = vmatpush2.msra.mxu1 %v207_v33  ;;  %v162_v33 = vld [vmem:[#allocation3 + $0x118] sm:$0xff]  ;;  %v548_v34 = vld [vmem:[#allocation8 + $0x8] sm:$0xff] }
  0x6a   :  { %292 = vmatprep.mubr.f32.mxu0 %v130_v35  ;;  %407 = vmatprep.mubr.f32.mxu1 %v176_v36  ;;  %v161_v35 = vld [vmem:[#allocation3 + $0x110] sm:$0xff]  ;;  %v164_v36 = vld [vmem:[#allocation3 + $0x128] sm:$0xff] }
  0x6b   :  { %408 = vmatmul.mubr.f32.vlgmr.msra.gmra.mxu1 %v175_v37  ;;  %894 = vmatprep.subr.mxu1 %v562_v38  ;;  %v547_v37 = vld [vmem:[#allocation8] sm:$0xff] }
  0x6c   :  { %412 = vmatprep.mubr.f32.mxu1 %v178_v39  ;;  %895 = vmatpush3.msra.mxu1 %v562_v38  ;;  %v163_v38 = vld [vmem:[#allocation3 + $0x120] sm:$0xff]  ;;  %v166_v39 = vld [vmem:[#allocation3 + $0x138] sm:$0xff] }
  0x6d   :  { %293 = vmatmul.mubr.f32.gmra.mxu0 %v129_v40  ;;  %896 = vmatprep.subr.mxu1 %v561_v41  ;;  %v165_v40 = vld [vmem:[#allocation3 + $0x130] sm:$0xff] }
  0x6e   :  { %297 = vmatprep.mubr.f32.mxu0 %v132_v42  ;;  %897 = vmatpush3.msra.mxu1 %v561_v41  ;;  %v168_v41 = vld [vmem:[#allocation3 + $0x148] sm:$0xff]  ;;  %v167_v42 = vld [vmem:[#allocation3 + $0x140] sm:$0xff] }
  0x6f   :  { %413 = vmatmul.mubr.f32.gmra.mxu1 %v177_v43  ;;  %898 = vmatprep.subr.mxu1 %v560_v44  ;;  %v170_v43 = vld [vmem:[#allocation3 + $0x158] sm:$0xff] }
  0x70   :  { %417 = vmatprep.mubr.f32.mxu1 %v180_v45  ;;  %899 = vmatpush3.msra.mxu1 %v560_v44  ;;  %v169_v44 = vld [vmem:[#allocation3 + $0x150] sm:$0xff]  ;;  %v172_v45 = vld [vmem:[#allocation3 + $0x168] sm:$0xff] }
  0x71   :  { %298 = vmatmul.mubr.f32.gmra.mxu0 %v131_v46  ;;  %900 = vmatprep.subr.mxu1 %v559_v47  ;;  %v171_v46 = vld [vmem:[#allocation3 + $0x160] sm:$0xff] }
  0x72   :  { %302 = vmatprep.mubr.f32.mxu0 %v134_v48  ;;  %901 = vmatpush3.msra.mxu1 %v559_v47  ;;  %v174_v47 = vld [vmem:[#allocation3 + $0x178] sm:$0xff]  ;;  %v173_v48 = vld [vmem:[#allocation3 + $0x170] sm:$0xff] }
  0x73   :  { %418 = vmatmul.mubr.f32.gmra.mxu1 %v179_v49  ;;  %902 = vmatprep.subr.mxu1 %v558_v50 }
  0x74   :  { %422 = vmatprep.mubr.f32.mxu1 %v182_v51  ;;  %903 = vmatpush3.msra.mxu1 %v558_v50 }
  0x75   :  { %303 = vmatmul.mubr.f32.gmra.mxu0 %v133_v52  ;;  %904 = vmatprep.subr.mxu1 %v557_v53 }
  0x76   :  { %307 = vmatprep.mubr.f32.mxu0 %v136_v54  ;;  %905 = vmatpush3.msra.mxu1 %v557_v53 }
  0x77   :  { %423 = vmatmul.mubr.f32.gmra.mxu1 %v181_v55  ;;  %906 = vmatprep.subr.mxu1 %v556_v56 }
  0x78   :  { %427 = vmatprep.mubr.f32.mxu1 %v184_v57  ;;  %907 = vmatpush3.msra.mxu1 %v556_v56 }
  0x79   :  { %308 = vmatmul.mubr.f32.gmra.mxu0 %v135_v58  ;;  %908 = vmatprep.subr.mxu1 %v555_v59 }
  0x7a   :  { %312 = vmatprep.mubr.f32.mxu0 %v138_v60  ;;  %909 = vmatpush3.msra.mxu1 %v555_v59 }
  0x7b   :  { %428 = vmatmul.mubr.f32.gmra.mxu1 %v183_v61  ;;  %910 = vmatprep.subr.mxu1 %v554_v62 }
  0x7c   :  { %432 = vmatprep.mubr.f32.mxu1 %v186_v63  ;;  %911 = vmatpush3.msra.mxu1 %v554_v62 }
  0x7d   :  { %313 = vmatmul.mubr.f32.gmra.mxu0 %v137_v0  ;;  %912 = vmatprep.subr.mxu1 %v553_v1 }
  0x7e   :  { %317 = vmatprep.mubr.f32.mxu0 %v140_v2  ;;  %913 = vmatpush3.msra.mxu1 %v553_v1 }
  0x7f   :  { %433 = vmatmul.mubr.f32.gmra.mxu1 %v185_v3  ;;  %914 = vmatprep.subr.mxu1 %v552_v4 }
  0x80   :  { %437 = vmatprep.mubr.f32.mxu1 %v188_v5  ;;  %915 = vmatpush3.msra.mxu1 %v552_v4 }
  0x81   :  { %318 = vmatmul.mubr.f32.gmra.mxu0 %v139_v6  ;;  %916 = vmatprep.subr.mxu1 %v551_v7 }
  0x82   :  { %322 = vmatprep.mubr.f32.mxu0 %v142_v8  ;;  %917 = vmatpush3.msra.mxu1 %v551_v7 }
  0x83   :  { %438 = vmatmul.mubr.f32.gmra.mxu1 %v187_v9  ;;  %918 = vmatprep.subr.mxu1 %v550_v10 }
  0x84   :  { %442 = vmatprep.mubr.f32.mxu1 %v190_v11  ;;  %919 = vmatpush3.msra.mxu1 %v550_v10 }
  0x85   :  { %323 = vmatmul.mubr.f32.gmra.mxu0 %v141_v12  ;;  %920 = vmatprep.subr.mxu1 %v549_v13 }
  0x86   :  { %327 = vmatprep.mubr.f32.mxu0 %v144_v14  ;;  %921 = vmatpush3.msra.mxu1 %v549_v13 }
  0x87   :  { %443 = vmatmul.mubr.f32.gmra.mxu1 %v189_v15  ;;  %922 = vmatprep.subr.mxu1 %v548_v34 }
  0x88   :  { %923 = vmatpush3.msra.mxu1 %v548_v34 }
  0x89   :  { %328 = vmatmul.mubr.f32.gmra.mxu0 %v143_v16  ;;  %924 = vmatprep.subr.mxu1 %v547_v37 }
  0x8a   :  { %332 = vmatprep.mubr.f32.mxu0 %v146_v17  ;;  %925 = vmatpush3.msra.mxu1 %v547_v37 }
  0x8d   :  { %333 = vmatmul.mubr.f32.gmra.mxu0 %v145_v18 }
  0x8e   :  { %337 = vmatprep.mubr.f32.mxu0 %v148_v19 }
  0x91   :  { %338 = vmatmul.mubr.f32.gmra.mxu0 %v147_v20 }
  0x92   :  { %342 = vmatprep.mubr.f32.mxu0 %v150_v21 }
  0x95   :  { %343 = vmatmul.mubr.f32.gmra.mxu0 %v149_v22 }
  0x96   :  { %347 = vmatprep.mubr.f32.mxu0 %v152_v23 }
  0x99   :  { %348 = vmatmul.mubr.f32.gmra.mxu0 %v151_v24 }
  0x9a   :  { %352 = vmatprep.mubr.f32.mxu0 %v154_v25 }
  0x9d   :  { %353 = vmatmul.mubr.f32.gmra.mxu0 %v153_v26 }
  0x9e   :  { %357 = vmatprep.mubr.f32.mxu0 %v156_v27 }
  0xa1   :  { %358 = vmatmul.mubr.f32.gmra.mxu0 %v155_v28 }
  0xa2   :  { %362 = vmatprep.mubr.f32.mxu0 %v158_v29 }
  0xa5   :  { %363 = vmatmul.mubr.f32.gmra.mxu0 %v157_v30 }
  0xa6   :  { %367 = vmatprep.mubr.f32.mxu0 %v160_v31 }
  0xa9   :  { %368 = vmatmul.mubr.f32.gmra.mxu0 %v159_v32 }
  0xaa   :  { %372 = vmatprep.mubr.f32.mxu0 %v162_v33 }
  0xad   :  { %373 = vmatmul.mubr.f32.gmra.mxu0 %v161_v35 }
  0xae   :  { %377 = vmatprep.mubr.f32.mxu0 %v164_v36 }
  0xb1   :  { %378 = vmatmul.mubr.f32.gmra.mxu0 %v163_v38 }
  0xb2   :  { %382 = vmatprep.mubr.f32.mxu0 %v166_v39 }
  0xb5   :  { %383 = vmatmul.mubr.f32.gmra.mxu0 %v165_v40 }
  0xb6   :  { %387 = vmatprep.mubr.f32.mxu0 %v168_v41 }
  0xb9   :  { %388 = vmatmul.mubr.f32.gmra.mxu0 %v167_v42 }
  0xba   :  { %392 = vmatprep.mubr.f32.mxu0 %v170_v43 }
  0xbd   :  { %393 = vmatmul.mubr.f32.gmra.mxu0 %v169_v44 }
  0xbe   :  { %397 = vmatprep.mubr.f32.mxu0 %v172_v45 }
  0xc1   :  { %398 = vmatmul.mubr.f32.gmra.mxu0 %v171_v46 }
  0xc2   :  { %402 = vmatprep.mubr.f32.mxu0 %v174_v47 }
  0xc5   :  { %403 = vmatmul.mubr.f32.gmra.mxu0 %v173_v48 }
 0x129   :  { %v289_v49 = vpop.f32.mrf.mxu0 }
 0x12a   :  { %926 = vmatprep.mubr.f32.mxu1 %v289_v49  ;;  %v1267_v49 = vld [vmem:[%s1310_s3] ss:$0 sm:$0xff]  ;;  %s1141_s3 = smov [#allocation9]  }
 0x12b   :  { %v291_v50 = vpop.f32.mrf.mxu0  ;;  %v1246_v51 = vpop.f32.mrf.mxu1  ;;  %s832_s7 = sshll.u32 %s1141_s3, 4  ;;  %s833_s7 = int_to_ptr.vmem [resolvable:$true] %s832_s7 }
 0x12c   :  { %s1107_s8 = scalar_lea.vmem %s833_s7, 4096  ;;  %p1112_p2 = scmp.lt.s32.totalorder %s833_s7, %s833_s7 }
 0x12d   :  { %v294_v52 = vpop.f32.mrf.mxu0  ;;  %v411_v53 = vpop.f32.mrf.mxu1  ;;  %p1108_p1 = scmp.ne.s32.totalorder %s833_s7, %s1107_s8  ;;  %p1113_p3 = scmp.lt.s32.totalorder %s1107_s8, %s1107_s8 }
 0x12e   :  { %927 = vmatmul.mubr.f32.vlgmr.msra.gmra.mxu1 %v294_v52 }
 0x12f   :  { %v296_v54 = vpop.f32.mrf.mxu0  ;;  %v1248_v55 = vpop.f32.mrf.mxu1  ;;  %p1114_p4 = por %p1113_p3, %p1112_p2 }
 0x131   :  { %v299_v56 = vpop.f32.mrf.mxu0  ;;  %v416_v57 = vpop.f32.mrf.mxu1  ;;  %p1115_p5 = pnand %p1114_p4, %p1108_p1 }
 0x132   :  { %929 = vmatprep.mubr.f32.mxu1 %v299_v56 }
 0x133   :  { %v301_v58 = vpop.f32.mrf.mxu0  ;;  %v1250_v59 = vpop.f32.mrf.mxu1 }
 0x135   :  { %v304_v60 = vpop.f32.mrf.mxu0  ;;  %v421_v61 = vpop.f32.mrf.mxu1 }
 0x136   :  { %930 = vmatmul.mubr.f32.gmra.mxu1 %v304_v60 }
 0x137   :  { %v306_v62 = vpop.f32.mrf.mxu0  ;;  %v1252_v63 = vpop.f32.mrf.mxu1 }
 0x139   :  { %v309_v0 = vpop.f32.mrf.mxu0  ;;  %v426_v1 = vpop.f32.mrf.mxu1 }
 0x13a   :  { %932 = vmatprep.mubr.f32.mxu1 %v309_v0 }
 0x13b   :  { %v311_v2 = vpop.f32.mrf.mxu0  ;;  %v1254_v3 = vpop.f32.mrf.mxu1 }
 0x13d   :  { %v314_v4 = vpop.f32.mrf.mxu0  ;;  %v431_v5 = vpop.f32.mrf.mxu1 }
 0x13e   :  { %933 = vmatmul.mubr.f32.gmra.mxu1 %v314_v4 }
 0x13f   :  { %v316_v6 = vpop.f32.mrf.mxu0  ;;  %v1256_v7 = vpop.f32.mrf.mxu1 }
 0x141   :  { %v319_v8 = vpop.f32.mrf.mxu0  ;;  %v436_v9 = vpop.f32.mrf.mxu1 }
 0x142   :  { %935 = vmatprep.mubr.f32.mxu1 %v319_v8 }
 0x143   :  { %v321_v10 = vpop.f32.mrf.mxu0  ;;  %v439_v11 = vpop.f32.mrf.mxu1 }
 0x145   :  { %v324_v12 = vpop.f32.mrf.mxu0  ;;  %v441_v13 = vpop.f32.mrf.mxu1 }
 0x146   :  { %936 = vmatmul.mubr.f32.gmra.mxu1 %v324_v12 }
 0x147   :  { %v326_v14 = vpop.f32.mrf.mxu0  ;;  %v444_v15 = vpop.f32.mrf.mxu1 }
 0x149   :  { %v329_v16 = vpop.f32.mrf.mxu0  ;;  %v446_v17 = vpop.f32.mrf.mxu1 }
 0x14a   :  { %938 = vmatprep.mubr.f32.mxu1 %v329_v16 }
 0x14b   :  { %v331_v18 = vpop.f32.mrf.mxu0 }
 0x14d   :  { %v334_v19 = vpop.f32.mrf.mxu0 }
 0x14e   :  { %939 = vmatmul.mubr.f32.gmra.mxu1 %v334_v19 }
 0x14f   :  { %v336_v20 = vpop.f32.mrf.mxu0 }
 0x151   :  { %v339_v21 = vpop.f32.mrf.mxu0 }
 0x152   :  { %941 = vmatprep.mubr.f32.mxu1 %v339_v21 }
 0x153   :  { %v341_v22 = vpop.f32.mrf.mxu0 }
 0x155   :  { %v344_v23 = vpop.f32.mrf.mxu0 }
 0x156   :  { %942 = vmatmul.mubr.f32.gmra.mxu1 %v344_v23 }
 0x157   :  { %v346_v24 = vpop.f32.mrf.mxu0 }
 0x159   :  { %v349_v25 = vpop.f32.mrf.mxu0 }
 0x15a   :  { %944 = vmatprep.mubr.f32.mxu1 %v349_v25 }
 0x15b   :  { %v351_v26 = vpop.f32.mrf.mxu0 }
 0x15d   :  { %v354_v27 = vpop.f32.mrf.mxu0 }
 0x15e   :  { %945 = vmatmul.mubr.f32.gmra.mxu1 %v354_v27 }
 0x15f   :  { %v356_v28 = vpop.f32.mrf.mxu0 }
 0x161   :  { %v359_v29 = vpop.f32.mrf.mxu0 }
 0x162   :  { %947 = vmatprep.mubr.f32.mxu1 %v359_v29 }
 0x163   :  { %v361_v30 = vpop.f32.mrf.mxu0 }
 0x165   :  { %v364_v31 = vpop.f32.mrf.mxu0 }
 0x166   :  { %948 = vmatmul.mubr.f32.gmra.mxu1 %v364_v31 }
 0x167   :  { %v366_v32 = vpop.f32.mrf.mxu0 }
 0x169   :  { %v369_v33 = vpop.f32.mrf.mxu0 }
 0x16a   :  { %950 = vmatprep.mubr.f32.mxu1 %v369_v33 }
 0x16b   :  { %v371_v34 = vpop.f32.mrf.mxu0 }
 0x16d   :  { %v374_v35 = vpop.f32.mrf.mxu0 }
 0x16e   :  { %951 = vmatmul.mubr.f32.gmra.mxu1 %v374_v35 }
 0x16f   :  { %v376_v36 = vpop.f32.mrf.mxu0 }
 0x171   :  { %v379_v37 = vpop.f32.mrf.mxu0 }
 0x172   :  { %953 = vmatprep.mubr.f32.mxu1 %v379_v37 }
 0x173   :  { %v381_v38 = vpop.f32.mrf.mxu0 }
 0x175   :  { %v384_v39 = vpop.f32.mrf.mxu0 }
 0x176   :  { %954 = vmatmul.mubr.f32.gmra.mxu1 %v384_v39 }
 0x177   :  { %v386_v40 = vpop.f32.mrf.mxu0 }
 0x179   :  { %v389_v41 = vpop.f32.mrf.mxu0 }
 0x17a   :  { %956 = vmatprep.mubr.f32.mxu1 %v389_v41 }
 0x17b   :  { %v391_v42 = vpop.f32.mrf.mxu0 }
 0x17d   :  { %v394_v43 = vpop.f32.mrf.mxu0 }
 0x17e   :  { %957 = vmatmul.mubr.f32.gmra.mxu1 %v394_v43 }
 0x17f   :  { %v396_v44 = vpop.f32.mrf.mxu0 }
 0x181   :  { %v399_v45 = vpop.f32.mrf.mxu0 }
 0x182   :  { %959 = vmatprep.mubr.f32.mxu1 %v399_v45 }
 0x183   :  { %v401_v46 = vpop.f32.mrf.mxu0 }
 0x185   :  { %v404_v47 = vpop.f32.mrf.mxu0 }
 0x186   :  { %960 = vmatmul.mubr.f32.gmra.mxu1 %v404_v47 }
 0x187   :  { %v406_v48 = vpop.f32.mrf.mxu0  ;;  %962 = vmatprep.mubr.f32.mxu1 %v1246_v51 }
 0x18a   :  { %963 = vmatmul.mubr.f32.gmra.mxu1 %v1248_v55 }
 0x18b   :  { %965 = vmatprep.mubr.f32.mxu1 %v1250_v59 }
 0x18e   :  { %966 = vmatmul.mubr.f32.gmra.mxu1 %v1252_v63 }
 0x18f   :  { %968 = vmatprep.mubr.f32.mxu1 %v1254_v3 }
 0x192   :  { %969 = vmatmul.mubr.f32.gmra.mxu1 %v1256_v7 }
 0x193   :  { %971 = vmatprep.mubr.f32.mxu1 %v439_v11 }
 0x196   :  { %972 = vmatmul.mubr.f32.gmra.mxu1 %v444_v15 }
 0x1ee   :  { %v928_v50 = vpop.f32.mrf.mxu1 }
 0x1ef   :  { %v642_v51 = vadd.f32 %v928_v50, %v1267_v49 }
 0x1f0   :  { %v636_v52 = vpop.f32.mrf.mxu1 }
 0x1f1   :  { %796 = vst [vmem:[#allocation9 + $0x8] sm:$0xff] %v642_v51  ;;  %v637_v53 = vadd.f32 %v1267_v49, %v636_v52 }
 0x1f3   :  { %795 = vst [vmem:[#allocation9] sm:$0xff] %v637_v53 }
 0x1f6   :  { %v931_v54 = vpop.f32.mrf.mxu1 }
 0x1f7   :  { %v652_v55 = vadd.f32 %v931_v54, %v1267_v49 }
 0x1f8   :  { %v646_v56 = vpop.f32.mrf.mxu1 }
 0x1f9   :  { %798 = vst [vmem:[#allocation9 + $0x18] sm:$0xff] %v652_v55  ;;  %v647_v57 = vadd.f32 %v1267_v49, %v646_v56 }
 0x1fb   :  { %797 = vst [vmem:[#allocation9 + $0x10] sm:$0xff] %v647_v57 }
 0x1fe   :  { %v934_v58 = vpop.f32.mrf.mxu1 }
 0x1ff   :  { %v662_v59 = vadd.f32 %v934_v58, %v1267_v49 }
 0x200   :  { %v656_v60 = vpop.f32.mrf.mxu1 }
 0x201   :  { %800 = vst [vmem:[#allocation9 + $0x28] sm:$0xff] %v662_v59  ;;  %v657_v61 = vadd.f32 %v1267_v49, %v656_v60 }
 0x203   :  { %799 = vst [vmem:[#allocation9 + $0x20] sm:$0xff] %v657_v61 }
 0x206   :  { %v937_v62 = vpop.f32.mrf.mxu1 }
 0x207   :  { %v672_v63 = vadd.f32 %v937_v62, %v1267_v49 }
 0x208   :  { %v666_v0 = vpop.f32.mrf.mxu1 }
 0x209   :  { %802 = vst [vmem:[#allocation9 + $0x38] sm:$0xff] %v672_v63  ;;  %v667_v1 = vadd.f32 %v1267_v49, %v666_v0 }
 0x20b   :  { %801 = vst [vmem:[#allocation9 + $0x30] sm:$0xff] %v667_v1 }
 0x20e   :  { %v940_v2 = vpop.f32.mrf.mxu1 }
 0x20f   :  { %v682_v3 = vadd.f32 %v940_v2, %v1267_v49 }
 0x210   :  { %v676_v4 = vpop.f32.mrf.mxu1 }
 0x211   :  { %804 = vst [vmem:[#allocation9 + $0x48] sm:$0xff] %v682_v3  ;;  %v677_v5 = vadd.f32 %v1267_v49, %v676_v4 }
 0x213   :  { %803 = vst [vmem:[#allocation9 + $0x40] sm:$0xff] %v677_v5 }
 0x216   :  { %v943_v6 = vpop.f32.mrf.mxu1 }
 0x217   :  { %v692_v7 = vadd.f32 %v943_v6, %v1267_v49 }
 0x218   :  { %v686_v8 = vpop.f32.mrf.mxu1 }
 0x219   :  { %806 = vst [vmem:[#allocation9 + $0x58] sm:$0xff] %v692_v7  ;;  %v687_v9 = vadd.f32 %v1267_v49, %v686_v8 }
 0x21b   :  { %805 = vst [vmem:[#allocation9 + $0x50] sm:$0xff] %v687_v9 }
 0x21e   :  { %v946_v10 = vpop.f32.mrf.mxu1 }
 0x21f   :  { %v702_v11 = vadd.f32 %v946_v10, %v1267_v49 }
 0x220   :  { %v696_v12 = vpop.f32.mrf.mxu1 }
 0x221   :  { %808 = vst [vmem:[#allocation9 + $0x68] sm:$0xff] %v702_v11  ;;  %v697_v13 = vadd.f32 %v1267_v49, %v696_v12 }
 0x223   :  { %807 = vst [vmem:[#allocation9 + $0x60] sm:$0xff] %v697_v13 }
 0x226   :  { %v949_v14 = vpop.f32.mrf.mxu1 }
 0x227   :  { %v712_v15 = vadd.f32 %v949_v14, %v1267_v49 }
 0x228   :  { %v706_v16 = vpop.f32.mrf.mxu1 }
 0x229   :  { %810 = vst [vmem:[#allocation9 + $0x78] sm:$0xff] %v712_v15  ;;  %v707_v17 = vadd.f32 %v1267_v49, %v706_v16 }
 0x22b   :  { %809 = vst [vmem:[#allocation9 + $0x70] sm:$0xff] %v707_v17 }
 0x22e   :  { %v952_v18 = vpop.f32.mrf.mxu1 }
 0x22f   :  { %v722_v19 = vadd.f32 %v952_v18, %v1267_v49 }
 0x230   :  { %v716_v20 = vpop.f32.mrf.mxu1 }
 0x231   :  { %812 = vst [vmem:[#allocation9 + $0x88] sm:$0xff] %v722_v19  ;;  %v717_v21 = vadd.f32 %v1267_v49, %v716_v20 }
 0x233   :  { %811 = vst [vmem:[#allocation9 + $0x80] sm:$0xff] %v717_v21 }
 0x236   :  { %v955_v22 = vpop.f32.mrf.mxu1 }
 0x237   :  { %v732_v23 = vadd.f32 %v955_v22, %v1267_v49 }
 0x238   :  { %v726_v24 = vpop.f32.mrf.mxu1 }
 0x239   :  { %814 = vst [vmem:[#allocation9 + $0x98] sm:$0xff] %v732_v23  ;;  %v727_v25 = vadd.f32 %v1267_v49, %v726_v24 }
 0x23b   :  { %813 = vst [vmem:[#allocation9 + $0x90] sm:$0xff] %v727_v25 }
 0x23e   :  { %v958_v26 = vpop.f32.mrf.mxu1 }
 0x23f   :  { %v742_v27 = vadd.f32 %v958_v26, %v1267_v49 }
 0x240   :  { %v736_v28 = vpop.f32.mrf.mxu1 }
 0x241   :  { %816 = vst [vmem:[#allocation9 + $0xa8] sm:$0xff] %v742_v27  ;;  %v737_v29 = vadd.f32 %v1267_v49, %v736_v28 }
 0x243   :  { %815 = vst [vmem:[#allocation9 + $0xa0] sm:$0xff] %v737_v29 }
 0x246   :  { %v961_v30 = vpop.f32.mrf.mxu1 }
 0x247   :  { %v752_v31 = vadd.f32 %v961_v30, %v1267_v49 }
 0x248   :  { %v746_v32 = vpop.f32.mrf.mxu1 }
 0x249   :  { %818 = vst [vmem:[#allocation9 + $0xb8] sm:$0xff] %v752_v31  ;;  %v747_v33 = vadd.f32 %v1267_v49, %v746_v32 }
 0x24a   :  { %v964_v34 = vpop.f32.mrf.mxu1 }
 0x24b   :  { %817 = vst [vmem:[#allocation9 + $0xb0] sm:$0xff] %v747_v33  ;;  %v762_v35 = vadd.f32 %v964_v34, %v1267_v49 }
 0x24c   :  { %v756_v36 = vpop.f32.mrf.mxu1 }
 0x24d   :  { %820 = vst [vmem:[#allocation9 + $0xc8] sm:$0xff] %v762_v35  ;;  %v757_v37 = vadd.f32 %v1267_v49, %v756_v36 }
 0x24e   :  { %v967_v38 = vpop.f32.mrf.mxu1 }
 0x24f   :  { %819 = vst [vmem:[#allocation9 + $0xc0] sm:$0xff] %v757_v37  ;;  %v772_v39 = vadd.f32 %v967_v38, %v1267_v49 }
 0x250   :  { %v766_v40 = vpop.f32.mrf.mxu1 }
 0x251   :  { %822 = vst [vmem:[#allocation9 + $0xd8] sm:$0xff] %v772_v39  ;;  %v767_v41 = vadd.f32 %v1267_v49, %v766_v40 }
 0x252   :  { %v970_v42 = vpop.f32.mrf.mxu1 }
 0x253   :  { %821 = vst [vmem:[#allocation9 + $0xd0] sm:$0xff] %v767_v41  ;;  %v782_v43 = vadd.f32 %v970_v42, %v1267_v49 }
 0x254   :  { %v776_v44 = vpop.f32.mrf.mxu1 }
 0x255   :  { %824 = vst [vmem:[#allocation9 + $0xe8] sm:$0xff] %v782_v43  ;;  %v777_v45 = vadd.f32 %v1267_v49, %v776_v44 }
 0x256   :  { %v973_v46 = vpop.f32.mrf.mxu1 }
 0x257   :  { %823 = vst [vmem:[#allocation9 + $0xe0] sm:$0xff] %v777_v45  ;;  %v792_v47 = vadd.f32 %v973_v46, %v1267_v49 }
 0x258   :  { %v786_v48 = vpop.f32.mrf.mxu1 }
 0x259   :  { %826 = vst [vmem:[#allocation9 + $0xf8] sm:$0xff] %v792_v47  ;;  %v787_v50 = vadd.f32 %v1267_v49, %v786_v48 }
 0x25b   :  { %825 = vst [vmem:[#allocation9 + $0xf0] sm:$0xff] %v787_v50 }
 0x25c   :  { %1118 = shalt.err (!%p1115_p5)
}
 0x25d   :  { %838 = dma.vmem_to_hbm [thread:$0]  %s833_s7, 4096, %s1311_s4, [#allocation5], %s1134_s18, %s1134_s18, %s1135_s19  }
 0x25e   :  { %1131 = dma.done.wait [#allocation5], 4096  }
 0x25f   :  { %1132 = vsyncadd [#allocation5], 4294963200 }
 0x260   :  { %842 = vsyncpa [#allocation4], 1 }
 0x261   :  { %843 = vsyncpa [#allocation7], 1 }
 0x262   :  { %844 = vsyncpa [#allocation5], 1 }

</bundles_post_ra>
